<compile_context>
chip_gen: v7x
topology: tpu7x:2x2x1
jax: 0.10.0
libtpu: 0.0.40
codegen_flags: <defaults>
</compile_context>

<pallas_src>
import functools

import jax
import jax.numpy as jnp
import numpy as np
from jax.experimental import pallas as pl
from jax.experimental.pallas import tpu as pltpu


# ----------------------------------------------------------------------------
# Fused Pallas kernel: num_layers x (Conv1d 'same' + ReLU) [+ linear interp].
# Layout: time on sublanes, channels on lanes; one batch element per grid step.
# ----------------------------------------------------------------------------
def _fused_tcn_kernel(*refs, num_layers, kernel_size, t_conv, with_interp):
    K = kernel_size
    pad = K // 2
    T = t_conv
    n_in = 1 + 2 * num_layers + (1 if with_interp else 0)

    xp_ref = refs[0]                              # (1, T + 2*pad, Cin0) pre-padded
    wb_refs = refs[1:1 + 2 * num_layers]          # per layer: (K*Cin_l, Cout), (1, Cout)
    interp_ref = refs[1 + 2 * num_layers] if with_interp else None
    o_ref = refs[n_in]                            # (1, T_out, Cout)
    act_ref = refs[n_in + 1]                      # VMEM scratch (T + 2*pad, Cout)

    # Zero the scratch once per grid step: its top/bottom `pad` halo rows provide
    # the 'same' zero padding for every layer after the first.
    act_ref[...] = jnp.zeros_like(act_ref)

    src = xp_ref[0]                               # (T + 2*pad, Cin0)
    act = None
    for layer in range(num_layers):               # static unroll over layers
        w = wb_refs[2 * layer][...]               # (K * Cin_l, Cout) im2col layout
        b = wb_refs[2 * layer + 1][...]           # (1, Cout)
        cout = w.shape[1]

        # im2col: column index = k*Cin + ci, matching the (K, Cin, Cout) reshape,
        # so the whole tap loop is a single wide MXU matmul.
        cols = jnp.concatenate([src[k:k + T, :] for k in range(K)], axis=-1)

        # Bias folded into the f32 accumulator init; ReLU epilogue stays in f32.
        acc = jnp.broadcast_to(b, (T, cout)).astype(jnp.float32)
        acc = acc + jnp.dot(cols, w, preferred_element_type=jnp.float32)
        act = jnp.maximum(acc, 0.0)

        if layer < num_layers - 1:
            # Keep the activation resident in VMEM (padded layout) for the next layer.
            act_ref[pad:pad + T, :] = act.astype(act_ref.dtype)
            src = act_ref[...]

    if with_interp:
        # F.interpolate(mode='linear', align_corners=False) as one small matmul.
        act = jnp.dot(interp_ref[...], act, preferred_element_type=jnp.float32)

    o_ref[0] = act.astype(o_ref.dtype)


def tcn_conv_stack_pallas(x, params, *, interp_matrix=None,
                          compute_dtype=jnp.float32):
    """x: (B, T, Cin0), params: list of (w (K, Cin_l, Cout), b (Cout,)).

    Runs the whole Conv1d+ReLU stack (and the optional linear-upsample epilogue)
    in a single fused pallas_call.
    """
    B, T, Cin0 = x.shape
    num_layers = len(params)
    K = params[0][0].shape[0]
    # torch Conv1d with padding=K//2 only preserves length for odd K.
    assert K % 2 == 1, "kernel_size must be odd for 'same'-length convolution"
    Cout = params[0][0].shape[2]
    pad = K // 2
    Tp = T + 2 * pad

    # 'same' padding of the first layer's input done once, outside the kernel.
    xp = jnp.pad(x.astype(compute_dtype), ((0, 0), (pad, pad), (0, 0)))

    flat_args = [xp]
    in_specs = [pl.BlockSpec((1, Tp, Cin0), lambda bi: (bi, 0, 0))]
    for (w, bvec) in params:
        k_, cin_l, cout_l = w.shape
        w2 = w.reshape(k_ * cin_l, cout_l).astype(compute_dtype)   # im2col weights
        flat_args += [w2, bvec.reshape(1, cout_l).astype(jnp.float32)]
        in_specs += [
            pl.BlockSpec((k_ * cin_l, cout_l), lambda bi: (0, 0)),  # resident weights
            pl.BlockSpec((1, cout_l), lambda bi: (0, 0)),
        ]

    with_interp = interp_matrix is not None
    if with_interp:
        T_out = interp_matrix.shape[0]
        flat_args.append(interp_matrix.astype(jnp.float32))
        in_specs.append(pl.BlockSpec((T_out, T), lambda bi: (0, 0)))
    else:
        T_out = T

    kernel = functools.partial(
        _fused_tcn_kernel, num_layers=num_layers, kernel_size=K,
        t_conv=T, with_interp=with_interp)

    return pl.pallas_call(
        kernel,
        out_shape=jax.ShapeDtypeStruct((B, T_out, Cout), x.dtype),
        grid=(B,),
        in_specs=in_specs,
        out_specs=pl.BlockSpec((1, T_out, Cout), lambda bi: (bi, 0, 0)),
        scratch_shapes=[pltpu.VMEM((Tp, Cout), compute_dtype)],
        compiler_params=pltpu.CompilerParams(
            dimension_semantics=("parallel",),   # shards batch over v7x's 2 TCs
        ),
    )(*flat_args)


# ----------------------------------------------------------------------------
# JAX glue matching the torch ops exactly.
# ----------------------------------------------------------------------------
def avg_pool1d(x, kernel, stride):
    """torch.nn.AvgPool1d(kernel, stride, padding=0, ceil_mode=False) on (B, T, C)."""
    B, T, C = x.shape
    T_out = (T - kernel) // stride + 1
    if kernel == stride:
        # Non-overlapping windows: pure reshape + one VPU mean (no strided gathers).
        return x[:, :T_out * kernel, :].reshape(B, T_out, kernel, C).mean(axis=2)
    base = jnp.arange(T_out) * stride
    windows = jnp.stack([x[:, base + k, :] for k in range(kernel)], axis=2)
    return windows.mean(axis=2)


def linear_interp_matrix(t_in, t_out):
    """Static (t_out, t_in) matrix reproducing
    F.interpolate(mode='linear', align_corners=False). Applied inside the kernel."""
    scale = t_in / t_out
    src = (np.arange(t_out, dtype=np.float64) + 0.5) * scale - 0.5
    src = np.maximum(src, 0.0)
    i0 = np.minimum(np.floor(src).astype(np.int64), t_in - 1)
    i1 = np.minimum(i0 + 1, t_in - 1)
    lam = src - i0
    A = np.zeros((t_out, t_in), dtype=np.float32)
    A[np.arange(t_out), i0] += (1.0 - lam).astype(np.float32)
    A[np.arange(t_out), i1] += lam.astype(np.float32)
    return jnp.asarray(A)


# ----------------------------------------------------------------------------
# Module: parameters + forward (mirrors TCNAggregator.forward)
# ----------------------------------------------------------------------------
def init_tcn_params(key, in_channels, out_channels, kernel_size, num_layers):
    params = []
    cin = in_channels
    for _ in range(num_layers):
        key, kw, kb = jax.random.split(key, 3)
        fan_in = cin * kernel_size
        bound = 1.0 / np.sqrt(fan_in)
        # weights stored WIO: (K, Cin, Cout)  (torch Conv1d weight is (Cout, Cin, K))
        w = jax.random.uniform(kw, (kernel_size, cin, out_channels),
                               jnp.float32, -bound, bound)
        b = jax.random.uniform(kb, (out_channels,), jnp.float32, -bound, bound)
        params.append((w, b))
        cin = out_channels
    return params


def tcn_aggregator_forward(x, params, *, downsample, stride, upsample,
                           compute_dtype=jnp.float32):
    """x: (B, T, D) -> (B, T', out_channels)."""
    T_orig = x.shape[1]
    if downsample > 1:
        x = avg_pool1d(x, kernel=downsample, stride=stride)
    interp = None
    if upsample and downsample > 1 and x.shape[1] != T_orig:
        interp = linear_interp_matrix(x.shape[1], T_orig)
    return tcn_conv_stack_pallas(x, params, interp_matrix=interp,
                                 compute_dtype=compute_dtype)


# ----------------------------------------------------------------------------
# Pure-JAX reference (for correctness check only).
# ----------------------------------------------------------------------------
def _linear_interpolate_ref(x, out_len):
    B, T_in, C = x.shape
    if T_in == out_len:
        return x
    scale = T_in / out_len
    dst = jnp.arange(out_len, dtype=jnp.float32)
    src = jnp.maximum((dst + 0.5) * scale - 0.5, 0.0)
    i0 = jnp.minimum(jnp.floor(src).astype(jnp.int32), T_in - 1)
    i1 = jnp.minimum(i0 + 1, T_in - 1)
    lam = (src - i0.astype(jnp.float32))[None, :, None]
    return x[:, i0, :] * (1.0 - lam) + x[:, i1, :] * lam


def _ref_forward(x, params, *, downsample, stride, upsample):
    T_orig = x.shape[1]
    if downsample > 1:
        x = avg_pool1d(x, kernel=downsample, stride=stride)
    for (w, b) in params:
        y = jax.lax.conv_general_dilated(
            x, w, window_strides=(1,), padding="SAME",
            dimension_numbers=("NWC", "WIO", "NWC"))
        x = jax.nn.relu(y + b[None, None, :])
    if upsample and downsample > 1:
        x = _linear_interpolate_ref(x, T_orig)
    return x


if __name__ == "__main__":
    # Small, module-consistent shapes.
    B, T, D = 2, 16, 32          # input (B, T, D)
    out_channels = 32
    kernel_size = 3
    num_layers = 3
    downsample = 2
    stride = 2
    upsample = True

    key = jax.random.PRNGKey(0)
    kx, kp = jax.random.split(key)
    x = jax.random.normal(kx, (B, T, D), jnp.float32)
    params = init_tcn_params(kp, D, out_channels, kernel_size, num_layers)

    # f32 path (tight tolerance check).
    fwd = jax.jit(functools.partial(
        tcn_aggregator_forward, downsample=downsample, stride=stride,
        upsample=upsample, compute_dtype=jnp.float32))
    out = jax.block_until_ready(fwd(x, params))

    ref = jax.block_until_ready(_ref_forward(
        x, params, downsample=downsample, stride=stride, upsample=upsample))

    expected_T = T if (upsample and downsample > 1) else (T - downsample) // stride + 1
    assert out.shape == (B, expected_T, out_channels), out.shape
    assert np.allclose(np.asarray(out), np.asarray(ref), rtol=1e-5, atol=1e-5)

    # bf16 fast path (MXU-native on v6e/v7x; accumulation stays f32) — looser check.
    fwd_bf16 = jax.jit(functools.partial(
        tcn_aggregator_forward, downsample=downsample, stride=stride,
        upsample=upsample, compute_dtype=jnp.bfloat16))
    out_bf16 = jax.block_until_ready(fwd_bf16(x, params))
    assert out_bf16.shape == out.shape
    assert np.allclose(np.asarray(out_bf16), np.asarray(ref), rtol=5e-2, atol=5e-2)

    print("KERNEL_OK")
</pallas_src>

<mosaic_0001>
module attributes {stable_mosaic.version = 11 : i64} {
  func.func @_fused_tcn_kernel(%arg0: i32, %arg1: memref<1x10x32xf32, #tpu.memory_space<vmem>>, %arg2: memref<96x32xf32, #tpu.memory_space<vmem>>, %arg3: memref<1x32xf32, #tpu.memory_space<vmem>>, %arg4: memref<96x32xf32, #tpu.memory_space<vmem>>, %arg5: memref<1x32xf32, #tpu.memory_space<vmem>>, %arg6: memref<96x32xf32, #tpu.memory_space<vmem>>, %arg7: memref<1x32xf32, #tpu.memory_space<vmem>>, %arg8: memref<16x8xf32, #tpu.memory_space<vmem>>, %arg9: memref<1x16x32xf32, #tpu.memory_space<vmem>>, %arg10: memref<10x32xf32, #tpu.memory_space<vmem>>) attributes {dimension_semantics = [#tpu.dimension_semantics<parallel>], iteration_bounds = array<i64: 2>, scalar_prefetch = 0 : i64, scratch_operands = 1 : i64, tpu.core_type = #tpu.core_type<tc>, window_params = [{transform_indices = @transform_0, window_bounds = array<i64: 1, 10, 32>}, {pipeline_mode = #tpu.pipeline_mode<synchronous>, transform_indices = @transform_1, window_bounds = array<i64: 96, 32>}, {pipeline_mode = #tpu.pipeline_mode<synchronous>, transform_indices = @transform_2, window_bounds = array<i64: 1, 32>}, {pipeline_mode = #tpu.pipeline_mode<synchronous>, transform_indices = @transform_3, window_bounds = array<i64: 96, 32>}, {pipeline_mode = #tpu.pipeline_mode<synchronous>, transform_indices = @transform_4, window_bounds = array<i64: 1, 32>}, {pipeline_mode = #tpu.pipeline_mode<synchronous>, transform_indices = @transform_5, window_bounds = array<i64: 96, 32>}, {pipeline_mode = #tpu.pipeline_mode<synchronous>, transform_indices = @transform_6, window_bounds = array<i64: 1, 32>}, {pipeline_mode = #tpu.pipeline_mode<synchronous>, transform_indices = @transform_7, window_bounds = array<i64: 16, 8>}, {transform_indices = @transform_8, window_bounds = array<i64: 1, 16, 32>}]} {
    %cst = arith.constant 0.000000e+00 : f32
    %0 = vector.broadcast %cst : f32 to vector<10x32xf32>
    %c0 = arith.constant 0 : index
    %c0_0 = arith.constant 0 : index
    %1 = vector.load %arg10[%c0, %c0_0] : memref<10x32xf32, #tpu.memory_space<vmem>>, vector<10x32xf32>
    tpu.vector_store %arg10[%c0, %c0_0], %0 {strides = array<i32>} : memref<10x32xf32, #tpu.memory_space<vmem>>, vector<10x32xf32>,
    %c0_1 = arith.constant 0 : index
    %c0_2 = arith.constant 0 : index
    %c0_3 = arith.constant 0 : index
    %2 = vector.load %arg1[%c0_1, %c0_2, %c0_3] : memref<1x10x32xf32, #tpu.memory_space<vmem>>, vector<1x10x32xf32>
    %3 = vector.shape_cast %2 : vector<1x10x32xf32> to vector<10x32xf32>
    %c0_4 = arith.constant 0 : index
    %c0_5 = arith.constant 0 : index
    %4 = vector.load %arg2[%c0_4, %c0_5] : memref<96x32xf32, #tpu.memory_space<vmem>>, vector<96x32xf32>
    %c0_6 = arith.constant 0 : index
    %c0_7 = arith.constant 0 : index
    %5 = vector.load %arg3[%c0_6, %c0_7] : memref<1x32xf32, #tpu.memory_space<vmem>>, vector<1x32xf32>
    %6 = vector.extract_strided_slice %3 {offsets = [0, 0], sizes = [8, 32], strides = [1, 1]} : vector<10x32xf32> to vector<8x32xf32>
    %7 = vector.extract_strided_slice %3 {offsets = [1, 0], sizes = [8, 32], strides = [1, 1]} : vector<10x32xf32> to vector<8x32xf32>
    %8 = vector.extract_strided_slice %3 {offsets = [2, 0], sizes = [8, 32], strides = [1, 1]} : vector<10x32xf32> to vector<8x32xf32>
    %9 = tpu.concatenate %6, %7, %8 in 1 : vector<8x32xf32>, vector<8x32xf32>, vector<8x32xf32> -> vector<8x96xf32>
    %10 = vector.shape_cast %5 : vector<1x32xf32> to vector<1x32xf32>
    %11 = vector.broadcast %10 : vector<1x32xf32> to vector<8x32xf32>
    %cst_8 = arith.constant dense<0.000000e+00> : vector<8x32xf32>
    %12 = tpu.matmul %9, %4, %cst_8 {dimension_numbers = #tpu.dot_dimension_numbers<[1], [0], [0], [1], [0, 0, 1, 1], [], []>} : vector<8x96xf32>, vector<96x32xf32>, vector<8x32xf32> -> vector<8x32xf32>
    %13 = arith.addf %11, %12 : vector<8x32xf32>
    %cst_9 = arith.constant 0.000000e+00 : f32
    %14 = vector.broadcast %cst_9 : f32 to vector<8x32xf32>
    %15 = arith.maximumf %13, %14 : vector<8x32xf32>
    %c1 = arith.constant 1 : index
    %c0_10 = arith.constant 0 : index
    %16 = vector.load %arg10[%c1, %c0_10] : memref<10x32xf32, #tpu.memory_space<vmem>>, vector<8x32xf32>
    tpu.vector_store %arg10[%c1, %c0_10], %15 {strides = array<i32>} : memref<10x32xf32, #tpu.memory_space<vmem>>, vector<8x32xf32>,
    %c0_11 = arith.constant 0 : index
    %c0_12 = arith.constant 0 : index
    %17 = vector.load %arg10[%c0_11, %c0_12] : memref<10x32xf32, #tpu.memory_space<vmem>>, vector<10x32xf32>
    %c0_13 = arith.constant 0 : index
    %c0_14 = arith.constant 0 : index
    %18 = vector.load %arg4[%c0_13, %c0_14] : memref<96x32xf32, #tpu.memory_space<vmem>>, vector<96x32xf32>
    %c0_15 = arith.constant 0 : index
    %c0_16 = arith.constant 0 : index
    %19 = vector.load %arg5[%c0_15, %c0_16] : memref<1x32xf32, #tpu.memory_space<vmem>>, vector<1x32xf32>
    %20 = vector.extract_strided_slice %17 {offsets = [0, 0], sizes = [8, 32], strides = [1, 1]} : vector<10x32xf32> to vector<8x32xf32>
    %21 = vector.extract_strided_slice %17 {offsets = [1, 0], sizes = [8, 32], strides = [1, 1]} : vector<10x32xf32> to vector<8x32xf32>
    %22 = vector.extract_strided_slice %17 {offsets = [2, 0], sizes = [8, 32], strides = [1, 1]} : vector<10x32xf32> to vector<8x32xf32>
    %23 = tpu.concatenate %20, %21, %22 in 1 : vector<8x32xf32>, vector<8x32xf32>, vector<8x32xf32> -> vector<8x96xf32>
    %24 = vector.shape_cast %19 : vector<1x32xf32> to vector<1x32xf32>
    %25 = vector.broadcast %24 : vector<1x32xf32> to vector<8x32xf32>
    %cst_17 = arith.constant dense<0.000000e+00> : vector<8x32xf32>
    %26 = tpu.matmul %23, %18, %cst_17 {dimension_numbers = #tpu.dot_dimension_numbers<[1], [0], [0], [1], [0, 0, 1, 1], [], []>} : vector<8x96xf32>, vector<96x32xf32>, vector<8x32xf32> -> vector<8x32xf32>
    %27 = arith.addf %25, %26 : vector<8x32xf32>
    %cst_18 = arith.constant 0.000000e+00 : f32
    %28 = vector.broadcast %cst_18 : f32 to vector<8x32xf32>
    %29 = arith.maximumf %27, %28 : vector<8x32xf32>
    %c1_19 = arith.constant 1 : index
    %c0_20 = arith.constant 0 : index
    %30 = vector.load %arg10[%c1_19, %c0_20] : memref<10x32xf32, #tpu.memory_space<vmem>>, vector<8x32xf32>
    tpu.vector_store %arg10[%c1_19, %c0_20], %29 {strides = array<i32>} : memref<10x32xf32, #tpu.memory_space<vmem>>, vector<8x32xf32>,
    %c0_21 = arith.constant 0 : index
    %c0_22 = arith.constant 0 : index
    %31 = vector.load %arg10[%c0_21, %c0_22] : memref<10x32xf32, #tpu.memory_space<vmem>>, vector<10x32xf32>
    %c0_23 = arith.constant 0 : index
    %c0_24 = arith.constant 0 : index
    %32 = vector.load %arg6[%c0_23, %c0_24] : memref<96x32xf32, #tpu.memory_space<vmem>>, vector<96x32xf32>
    %c0_25 = arith.constant 0 : index
    %c0_26 = arith.constant 0 : index
    %33 = vector.load %arg7[%c0_25, %c0_26] : memref<1x32xf32, #tpu.memory_space<vmem>>, vector<1x32xf32>
    %34 = vector.extract_strided_slice %31 {offsets = [0, 0], sizes = [8, 32], strides = [1, 1]} : vector<10x32xf32> to vector<8x32xf32>
    %35 = vector.extract_strided_slice %31 {offsets = [1, 0], sizes = [8, 32], strides = [1, 1]} : vector<10x32xf32> to vector<8x32xf32>
    %36 = vector.extract_strided_slice %31 {offsets = [2, 0], sizes = [8, 32], strides = [1, 1]} : vector<10x32xf32> to vector<8x32xf32>
    %37 = tpu.concatenate %34, %35, %36 in 1 : vector<8x32xf32>, vector<8x32xf32>, vector<8x32xf32> -> vector<8x96xf32>
    %38 = vector.shape_cast %33 : vector<1x32xf32> to vector<1x32xf32>
    %39 = vector.broadcast %38 : vector<1x32xf32> to vector<8x32xf32>
    %cst_27 = arith.constant dense<0.000000e+00> : vector<8x32xf32>
    %40 = tpu.matmul %37, %32, %cst_27 {dimension_numbers = #tpu.dot_dimension_numbers<[1], [0], [0], [1], [0, 0, 1, 1], [], []>} : vector<8x96xf32>, vector<96x32xf32>, vector<8x32xf32> -> vector<8x32xf32>
    %41 = arith.addf %39, %40 : vector<8x32xf32>
    %cst_28 = arith.constant 0.000000e+00 : f32
    %42 = vector.broadcast %cst_28 : f32 to vector<8x32xf32>
    %43 = arith.maximumf %41, %42 : vector<8x32xf32>
    %c0_29 = arith.constant 0 : index
    %c0_30 = arith.constant 0 : index
    %44 = vector.load %arg8[%c0_29, %c0_30] : memref<16x8xf32, #tpu.memory_space<vmem>>, vector<16x8xf32>
    %cst_31 = arith.constant dense<0.000000e+00> : vector<16x32xf32>
    %45 = tpu.matmul %44, %43, %cst_31 {dimension_numbers = #tpu.dot_dimension_numbers<[1], [0], [0], [1], [0, 0, 1, 1], [], []>} : vector<16x8xf32>, vector<8x32xf32>, vector<16x32xf32> -> vector<16x32xf32>
    %c0_32 = arith.constant 0 : index
    %c0_33 = arith.constant 0 : index
    %c0_34 = arith.constant 0 : index
    %46 = vector.load %arg9[%c0_32, %c0_33, %c0_34] : memref<1x16x32xf32, #tpu.memory_space<vmem>>, vector<1x16x32xf32>
    %47 = vector.shape_cast %46 : vector<1x16x32xf32> to vector<16x32xf32>
    %48 = vector.shape_cast %45 : vector<16x32xf32> to vector<1x16x32xf32>
    tpu.vector_store %arg9[%c0_32, %c0_33, %c0_34], %48 {strides = array<i32>} : memref<1x16x32xf32, #tpu.memory_space<vmem>>, vector<1x16x32xf32>,
    return
  }
  func.func @transform_0(%arg0: i32) -> (i32, i32, i32) {
    %c0_i32 = arith.constant 0 : i32
    %c0_i32_0 = arith.constant 0 : i32
    %c0_i32_1 = arith.constant 0 : i32
    return %arg0, %c0_i32, %c0_i32_0 : i32, i32, i32
  }
  func.func @transform_1(%arg0: i32) -> (i32, i32) {
    %c0_i32 = arith.constant 0 : i32
    %c0_i32_0 = arith.constant 0 : i32
    %c0_i32_1 = arith.constant 0 : i32
    return %c0_i32, %c0_i32_0 : i32, i32
  }
  func.func @transform_2(%arg0: i32) -> (i32, i32) {
    %c0_i32 = arith.constant 0 : i32
    %c0_i32_0 = arith.constant 0 : i32
    %c0_i32_1 = arith.constant 0 : i32
    return %c0_i32, %c0_i32_0 : i32, i32
  }
  func.func @transform_3(%arg0: i32) -> (i32, i32) {
    %c0_i32 = arith.constant 0 : i32
    %c0_i32_0 = arith.constant 0 : i32
    %c0_i32_1 = arith.constant 0 : i32
    return %c0_i32, %c0_i32_0 : i32, i32
  }
  func.func @transform_4(%arg0: i32) -> (i32, i32) {
    %c0_i32 = arith.constant 0 : i32
    %c0_i32_0 = arith.constant 0 : i32
    %c0_i32_1 = arith.constant 0 : i32
    return %c0_i32, %c0_i32_0 : i32, i32
  }
  func.func @transform_5(%arg0: i32) -> (i32, i32) {
    %c0_i32 = arith.constant 0 : i32
    %c0_i32_0 = arith.constant 0 : i32
    %c0_i32_1 = arith.constant 0 : i32
    return %c0_i32, %c0_i32_0 : i32, i32
  }
  func.func @transform_6(%arg0: i32) -> (i32, i32) {
    %c0_i32 = arith.constant 0 : i32
    %c0_i32_0 = arith.constant 0 : i32
    %c0_i32_1 = arith.constant 0 : i32
    return %c0_i32, %c0_i32_0 : i32, i32
  }
  func.func @transform_7(%arg0: i32) -> (i32, i32) {
    %c0_i32 = arith.constant 0 : i32
    %c0_i32_0 = arith.constant 0 : i32
    %c0_i32_1 = arith.constant 0 : i32
    return %c0_i32, %c0_i32_0 : i32, i32
  }
  func.func @transform_8(%arg0: i32) -> (i32, i32, i32) {
    %c0_i32 = arith.constant 0 : i32
    %c0_i32_0 = arith.constant 0 : i32
    %c0_i32_1 = arith.constant 0 : i32
    return %arg0, %c0_i32, %c0_i32_0 : i32, i32, i32
  }
}

</mosaic_0001>

<bundles_post_ra>
// kernel: tcn_aggregator_forward.1
= control target key start
LH: loop header
LB: loop body
LE: loop exit
PB: predicated region body
PF: predicated region fallthrough
CT: control target
= control target key end

     0   :  { %13 = vsyncpa [#allocation4], 0  ;;  %s1599_s0 = inlined_call_operand.vmem [shape: f32[2,10,32], index: 0, kind: input, shape index: {}]   ;;  %s1600_s1 = inlined_call_operand.vmem [shape: f32[96,32], index: 1, kind: input, shape index: {}]   ;;  %s1601_s2 = inlined_call_operand.vmem [shape: f32[1,32], index: 2, kind: input, shape index: {}]   ;;  %s1602_s3 = inlined_call_operand.hbm [shape: f32[96,32], index: 3, kind: input, shape index: {}]   ;;  %s1603_s4 = inlined_call_operand.vmem [shape: f32[1,32], index: 4, kind: input, shape index: {}]   ;;  %s1604_s5 = inlined_call_operand.hbm [shape: f32[96,32], index: 5, kind: input, shape index: {}]   ;;  %s1605_s6 = inlined_call_operand.vmem [shape: f32[1,32], index: 6, kind: input, shape index: {}]   ;;  %s1606_s7 = inlined_call_operand.vmem [shape: f32[16,8], index: 7, kind: input, shape index: {}]   ;;  %s1607_s8 = inlined_call_operand.hbm [shape: f32[2,16,32], index: 8, kind: output, shape index: {}]  }
   0x1   :  { %14 = vsyncpa [#allocation7], 0 }
   0x2   :  { %15 = vsyncpa [#allocation5], 0 }
   0x3   :  { %17 = vsyncpa [#allocation5 + $0x1], 0  ;;  %s1326_s27 = smov 0   ;;  %s1328_s28 = smov 0  }
   0x4   :  { %s1330_s29 = smov 0   ;;  %s1332_s30 = smov 0  }
   0x5 LB: > { %1612 = sst [smem:[#allocation12_spill]] %s1263_s29  ;;  %s1347_s9 = sadd.s32 4294967295, %s1267_s30   ;;  %s1267_s30 = sphi %s1332_s30, %s1629_s30   ;;  %s1263_s29 = sphi %s1330_s29, %s1626_s29   ;;  %s1259_s28 = sphi %s1328_s28, %s1628_s28   ;;  %s1255_s27 = sphi %s1326_s27, %s1627_s27  }
   0x6   : > { %s864_s10 = sadd.s32 4294967294, %s1267_s30   ;;  %s1351_s11 = sadd.s32 1, %s1267_s30  }
   0x7   : > { %s203_s12 = sadd.s32 1, %s1263_s29  ;;  %s200_s13 = ssub.s32 %s1267_s30, %s1351_s11 }
   0x8   : > { %p213_p0 = scmp.ne.s32.totalorder %s1263_s29, %s1259_s28  ;;  %p201_p1 = scmp.eq.s32.totalorder %s200_s13, 0 }
   0x9   : > { %p214_p2 = scmp.eq.s32.totalorder %s1347_s9, 1  ;;  %p219_p3 = scmp.ne.s32.totalorder %s1259_s28, %s1255_s27 }
   0xa   : > { %p220_p4 = scmp.eq.s32.totalorder %s864_s10, 1  ;;  %p865_p7 = scmp.ge.s32.totalorder %s1267_s30, 1 }
   0xb   : > { %s1362_s14 = scalar_select %p201_p1, %s1263_s29, %s203_s12  }
   0xc   : > { %p1364_p5 = por %p214_p2, %p213_p0  ;;  %p1368_p6 = por %p220_p4, %p219_p3 }
   0xd   : > { %1613 = sst [smem:[#allocation13_spill]] %s1362_s14  ;;  %p227_p8 = scmp.lt.s32.totalorder %s1267_s30, 3 }
   0xe   : > { %s1614_s15 = scalar_select %p1364_p5, 1, 0 }
   0xf   : > { %s1615_s16 = scalar_select %p1368_p6, 1, 0 }
  0x10   : > { %p1608_p9 = scmp.eq.s32.totalorder %s1347_s9, 0  ;;  %p1375_p10 = pnand %p865_p7, %p227_p8 }
  0x11   : > { %s1269_s18 = smov [#allocation3]   ;;  %s1270_s21 = smov [#allocation6]  }
  0x12   : > { %s1616_s17 = scalar_select %p1375_p10, 1, 0 }
  0x13   : > { %s245_s19 = sshll.u32 %s1269_s18, 4  ;;  %p1082_p11 = pneg %p1375_p10  ;;  %s246_s19 = int_to_ptr.vmem [resolvable:$true] %s245_s19 }
  0x14   : > { %s261_s22 = sshll.u32 %s1270_s21, 4  ;;  %s1141_s25 = scalar_lea.hbm %s1602_s3, 1536  ;;  %s1387_s22 = int_to_ptr.vmem [resolvable:$true] %s261_s22 }
  0x15   : > { %p1383_p12 = pnand %p1608_p9, %p1082_p11  ;;  %p1142_p13 = scmp.ne.s32.totalorder %s1602_s3, %s1141_s25 }
  0x16   : > { %p1148_p3 = scmp.lt.u32.totalorder %s1141_s25, %s1602_s3 }
  0x17   : > { %p1143_p0 = pneg %p1383_p12 }
  0x19   : > { %p1144_p1 = pnand %p1143_p0, %p1142_p13 }
  0x1b   : > { %p1145_p2 = pneg %p1144_p1 }
  0x1d   : > { %p1150_p4 = pnand %p1148_p3, %p1145_p2 }
  0x1f   : > { %1153 = shalt.err (!%p1150_p4)
}
  0x20   : > { %s1154_s18 = scalar_lea.vmem %s246_s19, 1536  ;;  %p1162_p9 = scmp.lt.s32.totalorder %s246_s19, %s246_s19 }
  0x21   : > { %p1155_p7 = scmp.ne.s32.totalorder %s246_s19, %s1154_s18  ;;  %p1163_p6 = scmp.lt.s32.totalorder %s1154_s18, %s1154_s18 }
  0x23   : > { %p1157_p8 = pnand %p1155_p7, %p1143_p0  ;;  %p1164_p5 = por %p1163_p6, %p1162_p9 }
  0x25   : > { %p1158_p11 = pneg %p1157_p8 }
  0x27   : > { %p1165_p10 = pnand %p1164_p5, %p1158_p11 }
  0x29   : > { %1168 = shalt.err (!%p1165_p10)
}
  0x2a   : > { %s1271_s21 = smov 128   ;;  %s1272_s23 = smov 8  }
  0x2b   : > { %1085 = dma.hbm_to_vmem [thread:$0]  (!%p1383_p12), %s1602_s3, 1536, %s246_s19, [#allocation4], %s1271_s21, %s1271_s21, %s1272_s23  }
  0x2c   : > { %s1169_s12 = scalar_lea.hbm %s1604_s5, 1536 }
  0x2d   : > { %p1170_p13 = scmp.ne.s32.totalorder %s1604_s5, %s1169_s12  ;;  %p1176_p9 = scmp.lt.u32.totalorder %s1169_s12, %s1604_s5 }
  0x2f   : > { %p1172_p5 = pnand %p1170_p13, %p1143_p0 }
  0x31   : > { %p1173_p6 = pneg %p1172_p5 }
  0x33   : > { %p1178_p10 = pnand %p1176_p9, %p1173_p6 }
  0x35   : > { %1181 = shalt.err (!%p1178_p10)
}
  0x36   : > { %s1182_s19 = scalar_lea.vmem %s1387_s22, 1536  ;;  %p1190_p4 = scmp.lt.s32.totalorder %s1387_s22, %s1387_s22 }
  0x37   : > { %p1183_p1 = scmp.ne.s32.totalorder %s1387_s22, %s1182_s19  ;;  %p1191_p7 = scmp.lt.s32.totalorder %s1182_s19, %s1182_s19 }
  0x39   : > { %p1185_p2 = pnand %p1183_p1, %p1143_p0  ;;  %p1192_p8 = por %p1191_p7, %p1190_p4 }
  0x3b   : > { %p1186_p3 = pneg %p1185_p2 }
  0x3d   : > { %p1193_p11 = pnand %p1192_p8, %p1186_p3 }
  0x3f   : > { %1196 = shalt.err (!%p1193_p11)
}
  0x40   : > { %1088 = dma.hbm_to_vmem [thread:$0]  (!%p1383_p12), %s1604_s5, 1536, %s1387_s22, [#allocation7], %s1271_s21, %s1271_s21, %s1272_s23  }
  0x41   : > { %p1618_p13 = scmp.ne.s32.totalorder %s1616_s17, 0 }
  0x42   : > { %p1619_p5 = scmp.eq.s32.totalorder (!%p1618_p13), %s1347_s9, 0 }
  0x43   : > { %291 = sbr.rel (%p1618_p13) target bundleno = 1346 (0x542), region = 52 }
  0x4a   : > { %1242 = dma.done.wait (%p1619_p5), [#allocation4], 1536   ;;  %p1620_p0 = pmov %p1619_p5 }
  0x4c   : > { %1244 = vsyncadd (%p1620_p0), [#allocation4], 4294965760  ;;  %p1621_p6 = pmov %p1620_p0 }
  0x4d   : > { %p1622_p9 = pmov %p1620_p0 }
  0x4e   : > { %1246 = dma.done.wait (%p1621_p6), [#allocation7], 1536  }
  0x4f   : > { %1248 = vsyncadd (%p1622_p9), [#allocation7], 4294965760  ;;  %p329_p10 = scmp.lt.s32.totalorder %s1347_s9, 1  ;;  %vm334_vm0 = vcmask 261120   ;;  %v1273_v0 = vmov 0.0|0.0   ;;  %v1274_v1 = vmov 0.0  }
  0x50   : > { %1018 = vmatprep.subr.bf16.mxu0 %v1273_v0  ;;  %335 = vst.msk [vmem:[#allocation2] sm:$0xff] %vm334_vm0, %v1274_v1  ;;  %vm336_vm1 = vcmask 254976   ;;  %1036 = vmatprep.subr.bf16.mxu1 %v1273_v0  ;;  %vm1275_vm2 = vmmov 0   ;;  %vm355_vm3 = vcmask 1046528   ;;  %v340_v4 = vld [vmem:[%s1600_s1] sm:$0xff]  ;;  %v341_v9 = vld [vmem:[%s1600_s1 + $0x8] sm:$0xff] }
  0x51   : > { %s330_s20 = scalar_select %p329_p10, %s1347_s9, 1  ;;  %337 = vst.msk [vmem:[#allocation2 + $0x8] sm:$0x3] %vm336_vm1, %v1274_v1  ;;  %956 = vmatprep.mubr.msk.f32.mxu0 %vm1275_vm2, %v1274_v1  ;;  %983 = vmatprep.mubr.msk.f32.mxu1 %vm1275_vm2, %v1274_v1  ;;  %v342_v10 = vld [vmem:[%s1600_s1 + $0x10] sm:$0xff]  ;;  %vm362_vm4 = vcmask 1045504   ;;  %v1019_v11 = vpack.c.bf16 %v341_v9, %v340_v4  ;;  %v343_v12 = vld [vmem:[%s1600_s1 + $0x18] sm:$0xff] }
  0x52   : > { %s1276_s29 = smov 32   ;;  %v1022_v14 = vpack.c.bf16 %v343_v12, %v342_v10  ;;  %v344_v16 = vld [vmem:[%s1600_s1 + $0x20] sm:$0xff]  ;;  %v345_v17 = vld [vmem:[%s1600_s1 + $0x28] sm:$0xff]  ;;  %s1277_s21 = smov 64   ;;  %v346_v19 = vld [vmem:[%s1600_s1 + $0x30] sm:$0xff]  ;;  %vm370_vm5 = vcmask 523264  }
  0x53   : > { %s888_s17 = sshll.u32 %s330_s20, 4  ;;  %1020 = vmatpush3.bf16.msra.mxu0 %v1019_v11  ;;  %v1025_v18 = vpack.c.bf16 %v345_v17, %v344_v16  ;;  %v347_v20 = vld [vmem:[%s1600_s1 + $0x38] sm:$0xff]  ;;  %v348_v22 = vld [vmem:[%s1600_s1 + $0x40] sm:$0xff]  ;;  %v349_v23 = vld [vmem:[%s1600_s1 + $0x48] sm:$0xff]  ;;  %vm378_vm6 = vcmask 785408   ;;  %vm682_vm7 = vcmask 64512  }
  0x54   : > { %s333_s23 = scalar_lea.vmem %s1599_s0, %s888_s17  ;;  %1021 = vmatprep.subr.bf16.mxu0 %v1273_v0  ;;  %v1028_v21 = vpack.c.bf16 %v347_v20, %v346_v19  ;;  %v1031_v24 = vpack.c.bf16 %v349_v23, %v348_v22  ;;  %v350_v25 = vld [vmem:[%s1600_s1 + $0x50] sm:$0xff]  ;;  %v351_v26 = vld [vmem:[%s1600_s1 + $0x58] sm:$0xff]  ;;  %v459_v34 = vld [vmem:[#allocation3 + $0x10] sm:$0xff]  ;;  %s326_s18 = sand.u32 1, %s1259_s28  }
  0x55   : > { %v338_v2 = vld [vmem:[%s333_s23] sm:$0xff]  ;;  %v339_v3 = vld [vmem:[%s333_s23 + $0x8] sm:$0x3]  ;;  %v1034_v27 = vpack.c.bf16 %v351_v26, %v350_v25  ;;  %v457_v32 = vld [vmem:[#allocation3] sm:$0xff]  ;;  %s872_s19 = sshll.u32 %s326_s18, 4  ;;  %s889_s17 = sshll.u32 %s1347_s9, 8 }
  0x56   : > { %v356_v5 = vrot.slane %v338_v2, 1  ;;  %v357_v6 = vrot.slane %v339_v3, 1  ;;  %v363_v7 = vrot.slane %v338_v2, 2  ;;  %v364_v8 = vrot.slane %v339_v3, 2  ;;  %v458_v33 = vld [vmem:[#allocation3 + $0x8] sm:$0xff]  ;;  %v460_v36 = vld [vmem:[#allocation3 + $0x18] sm:$0xff]  ;;  %s1554_s24 = scalar_lea.hbm %s1607_s8, %s889_s17 }
  0x57   : > { %1023 = vmatpush3.bf16.msra.mxu0 %v1022_v14  ;;  %v1037_v35 = vpack.c.bf16 %v458_v33, %v457_v32  ;;  %v1040_v37 = vpack.c.bf16 %v460_v36, %v459_v34  ;;  %v461_v38 = vld [vmem:[#allocation3 + $0x20] sm:$0xff]  ;;  %v462_v39 = vld [vmem:[#allocation3 + $0x28] sm:$0xff]  ;;  %v463_v41 = vld [vmem:[#allocation3 + $0x30] sm:$0xff]  ;;  %s328_s14 = scalar_lea.vmem [#allocation8], %s872_s19  ;;  %s1558_s25 = scalar_lea.sflag [#allocation5], %s326_s18 }
  0x58   : > { %v358_v13 = vsel %vm355_vm3, %v356_v5, %v357_v6  ;;  %v365_v15 = vsel %vm362_vm4, %v363_v7, %v364_v8  ;;  %1024 = vmatprep.subr.bf16.mxu0 %v1273_v0  ;;  %v1043_v40 = vpack.c.bf16 %v462_v39, %v461_v38  ;;  %v464_v42 = vld [vmem:[#allocation3 + $0x38] sm:$0xff]  ;;  %v465_v44 = vld [vmem:[#allocation3 + $0x40] sm:$0xff]  ;;  %v466_v45 = vld [vmem:[#allocation3 + $0x48] sm:$0xff]  ;;  %s780_s20 = sshll.u32 %s328_s14, 4  ;;  %p1623_p1 = scmp.ne.s32.totalorder %s1614_s15, 0  ;;  %s1549_s20 = int_to_ptr.vmem [resolvable:$true] %s780_s20 }
  0x59   : > { %359 = vrot.lane.b32.xlu0 %v358_v13, %s1276_s29  ;;  %1038 = vmatpush3.bf16.msra.mxu1 %v1037_v35  ;;  %v1046_v43 = vpack.c.bf16 %v464_v42, %v463_v41  ;;  %v1049_v46 = vpack.c.bf16 %v466_v45, %v465_v44  ;;  %v875_v47 = vld [vmem:[%s1601_s2] ss:$0 sm:$0xff]  ;;  %v468_v52 = vld [vmem:[#allocation3 + $0x58] sm:$0xff]  ;;  %v570_v4 = vld [vmem:[#allocation6] sm:$0xff]  ;;  %s1197_s26 = scalar_lea.vmem %s1549_s20, 256  ;;  %s1278_s9 = smov [#allocation8]  }
  0x5a   : > { %1039 = vmatprep.subr.bf16.mxu1 %v1273_v0  ;;  %v467_v51 = vld [vmem:[#allocation3 + $0x50] sm:$0xff]  ;;  %v571_v5 = vld [vmem:[#allocation6 + $0x8] sm:$0xff]  ;;  %v573_v8 = vld [vmem:[#allocation6 + $0x18] sm:$0xff]  ;;  %p1198_p12 = scmp.ne.s32.totalorder %s1549_s20, %s1197_s26  ;;  %s1201_s10 = sshll.u32 %s1278_s9, 4  ;;  %s1202_s10 = int_to_ptr.vmem [resolvable:$false] %s1201_s10 }
  0x5b   : > { %1026 = vmatpush3.bf16.msra.mxu0 %v1025_v18  ;;  %v1052_v54 = vpack.c.bf16 %v468_v52, %v467_v51  ;;  %v572_v6 = vld [vmem:[#allocation6 + $0x10] sm:$0xff]  ;;  %v1055_v7 = vpack.c.bf16 %v571_v5, %v570_v4  ;;  %v574_v10 = vld [vmem:[#allocation6 + $0x20] sm:$0xff]  ;;  %v575_v11 = vld [vmem:[#allocation6 + $0x28] sm:$0xff]  ;;  %s1203_s12 = scalar_lea.vmem %s1202_s10, 512  ;;  %p1204_p4 = scmp.lt.s32.totalorder %s1549_s20, %s1202_s10 }
  0x5c   : > { %1027 = vmatprep.subr.bf16.mxu0 %v1273_v0  ;;  %v1058_v9 = vpack.c.bf16 %v573_v8, %v572_v6  ;;  %v1061_v12 = vpack.c.bf16 %v575_v11, %v574_v10  ;;  %v576_v13 = vld [vmem:[#allocation6 + $0x30] sm:$0xff]  ;;  %v577_v14 = vld [vmem:[#allocation6 + $0x38] sm:$0xff]  ;;  %v578_v16 = vld [vmem:[#allocation6 + $0x40] sm:$0xff]  ;;  %p1199_p2 = pnand %p1198_p12, %p1623_p1  ;;  %p1205_p7 = scmp.lt.s32.totalorder %s1203_s12, %s1197_s26 }
  0x5d   : > { %366 = vrot.lane.b32.xlu0 %v365_v15, %s1277_s21  ;;  %1041 = vmatpush3.bf16.msra.mxu1 %v1040_v37  ;;  %v1064_v15 = vpack.c.bf16 %v577_v14, %v576_v13  ;;  %v579_v17 = vld [vmem:[#allocation6 + $0x48] sm:$0xff]  ;;  %v580_v19 = vld [vmem:[#allocation6 + $0x50] sm:$0xff]  ;;  %v581_v20 = vld [vmem:[#allocation6 + $0x58] sm:$0xff] }
  0x5e   : > { %1042 = vmatprep.subr.bf16.mxu1 %v1273_v0  ;;  %v1067_v18 = vpack.c.bf16 %v579_v17, %v578_v16  ;;  %v877_v22 = vld [vmem:[%s1603_s4] ss:$0 sm:$0xff]  ;;  %v681_v44 = vld [vmem:[%s1606_s7 + $0x8] sm:$0xff]  ;;  %p1200_p3 = pneg %p1199_p2  ;;  %p1206_p8 = por %p1205_p7, %p1204_p4 }
  0x5f   : > { %1029 = vmatpush3.bf16.msra.mxu0 %v1028_v21  ;;  %v1070_v21 = vpack.c.bf16 %v581_v20, %v580_v19  ;;  %v680_v38 = vld [vmem:[%s1606_s7] sm:$0xff] }
  0x60   : > { %1030 = vmatprep.subr.bf16.mxu0 %v1273_v0  ;;  %v879_v39 = vld [vmem:[%s1605_s6] ss:$0 sm:$0xff]  ;;  %p1207_p11 = pnand %p1206_p8, %p1200_p3 }
  0x61   : > { %1044 = vmatpush3.bf16.msra.mxu1 %v1043_v40 }
  0x62   : > { %1045 = vmatprep.subr.bf16.mxu1 %v1273_v0 }
  0x63   : > { %1032 = vmatpush3.bf16.msra.mxu0 %v1031_v24 }
  0x64   : > { %1033 = vmatprep.subr.bf16.mxu0 %v1273_v0 }
  0x65   : > { %1047 = vmatpush3.bf16.msra.mxu1 %v1046_v43 }
  0x66   : > { %1048 = vmatprep.subr.bf16.mxu1 %v1273_v0 }
  0x67   : > { %1035 = vmatpush3.bf16.msra.mxu0 %v1034_v27 }
  0x68   : > { %1054 = vmatprep.subr.bf16.mxu0 %v1273_v0 }
  0x69   : > { %1050 = vmatpush3.bf16.msra.mxu1 %v1049_v46 }
  0x6a   : > { %1051 = vmatprep.subr.bf16.mxu1 %v1273_v0 }
  0x6d   : > { %1053 = vmatpush3.bf16.msra.mxu1 %v1052_v54 }
  0xcb   : > { %v360_v28 = vpop.permute.xlu0 %359 }
  0xcc   : > { %v369_v29 = vsel %vm334_vm0, %v338_v2, %v360_v28 }
  0xcf   : > { %v367_v30 = vpop.permute.xlu0 %366 }
  0xd0   : > { %v371_v31 = vsel %vm370_vm5, %v369_v29, %v367_v30 }
  0xd1   : > { %957 = vmatmul.mubr.msk.f32.vlgmr.msra.gmra.mrb[0].mxu0 %vm378_vm6, %v371_v31 }
  0xd2   : > { %1010 = vmatprep.mubr.msk.f32.mxu0 %vm1275_vm2, %v1274_v1  ;;  %1056 = vmatpush3.bf16.msra.mxu0 %v1055_v7 }
  0xd3   : > { %1057 = vmatprep.subr.bf16.mxu0 %v1273_v0 }
  0xd6   : > { %1059 = vmatpush3.bf16.msra.mxu0 %v1058_v9 }
  0xd7   : > { %1060 = vmatprep.subr.bf16.mxu0 %v1273_v0 }
  0xda   : > { %1062 = vmatpush3.bf16.msra.mxu0 %v1061_v12 }
  0xdb   : > { %1063 = vmatprep.subr.bf16.mxu0 %v1273_v0 }
  0xde   : > { %1065 = vmatpush3.bf16.msra.mxu0 %v1064_v15 }
  0xdf   : > { %1066 = vmatprep.subr.bf16.mxu0 %v1273_v0 }
  0xe2   : > { %1068 = vmatpush3.bf16.msra.mxu0 %v1067_v18 }
  0xe3   : > { %1069 = vmatprep.subr.bf16.mxu0 %v1273_v0 }
  0xe6   : > { %1071 = vmatpush3.bf16.msra.mxu0 %v1070_v21 }
 0x1a4   : > { %v448_v48 = vpop.f32.mrb[0].mxu0 }
 0x1a5   : > { %v452_v49 = vadd.f32 %v875_v47, %v448_v48  ;;  %v958_v50 = vpop.f32.mrb[1].mxu0 }
 0x1a7   : > { %v453_v53 = vmax.f32 %v452_v49, 0.0 }
 0x1a9   : > { %454 = vst.msk [vmem:[#allocation2 + $0x1] sm:$0xff] %vm334_vm0, %v453_v53 }
 0x1b0   : > { %v455_v55 = vld [vmem:[#allocation2] sm:$0xff]  ;;  %v456_v56 = vld [vmem:[#allocation2 + $0x8] sm:$0x3] }
 0x1b1   : > { %v472_v57 = vrot.slane %v455_v55, 1  ;;  %v473_v58 = vrot.slane %v456_v56, 1  ;;  %v478_v60 = vrot.slane %v455_v55, 2  ;;  %v479_v61 = vrot.slane %v456_v56, 2 }
 0x1b3   : > { %v474_v59 = vsel %vm355_vm3, %v472_v57, %v473_v58  ;;  %v480_v62 = vsel %vm362_vm4, %v478_v60, %v479_v61 }
 0x1b4   : > { %475 = vrot.lane.b32.xlu1 %v474_v59, %s1276_s29 }
 0x1b8   : > { %481 = vrot.lane.b32.xlu1 %v480_v62, %s1277_s21 }
 0x226   : > { %v476_v63 = vpop.permute.xlu1 %475 }
 0x227   : > { %v484_v1 = vsel %vm334_vm0, %v455_v55, %v476_v63 }
 0x22a   : > { %v482_v2 = vpop.permute.xlu1 %481 }
 0x22b   : > { %v485_v3 = vsel %vm370_vm5, %v484_v1, %v482_v2 }
 0x22c   : > { %984 = vmatmul.mubr.msk.f32.vlgmr.msra.gmra.mrb[0].mxu1 %vm378_vm6, %v485_v3 }
 0x22d   : > { %1015 = vmatprep.mubr.msk.f32.mxu1 %vm682_vm7, %v680_v38 }
 0x2ff   : > { %v561_v23 = vpop.f32.mrb[0].mxu1 }
 0x300   : > { %v565_v24 = vadd.f32 %v877_v22, %v561_v23  ;;  %v985_v25 = vpop.f32.mrb[1].mxu1 }
 0x302   : > { %v566_v26 = vmax.f32 %v565_v24, 0.0 }
 0x304   : > { %567 = vst.msk [vmem:[#allocation2 + $0x1] sm:$0xff] %vm334_vm0, %v566_v26 }
 0x30b   : > { %v568_v27 = vld [vmem:[#allocation2] sm:$0xff]  ;;  %v569_v28 = vld [vmem:[#allocation2 + $0x8] sm:$0x3] }
 0x30c   : > { %v591_v29 = vrot.slane %v568_v27, 2  ;;  %v592_v30 = vrot.slane %v569_v28, 2  ;;  %v585_v31 = vrot.slane %v568_v27, 1  ;;  %v586_v32 = vrot.slane %v569_v28, 1 }
 0x30e   : > { %v593_v33 = vsel %vm362_vm4, %v591_v29, %v592_v30  ;;  %v587_v0 = vsel %vm355_vm3, %v585_v31, %v586_v32 }
 0x30f   : > { %594 = vrot.lane.b32.xlu1 %v593_v33, %s1277_s21  ;;  %588 = vrot.lane.b32.xlu0 %v587_v0, %s1276_s29 }
 0x381   : > { %v595_v34 = vpop.permute.xlu1 %594  ;;  %v589_v35 = vpop.permute.xlu0 %588 }
 0x382   : > { %v597_v36 = vsel %vm334_vm0, %v568_v27, %v589_v35 }
 0x383   : > { %v598_v37 = vsel %vm370_vm5, %v597_v36, %v595_v34 }
 0x384   : > { %1011 = vmatmul.mubr.msk.f32.vlgmr.msra.gmra.mrb[2].mxu0 %vm378_vm6, %v598_v37 }
 0x457   : > { %v674_v40 = vpop.f32.mrb[2].mxu0 }
 0x458   : > { %v678_v41 = vadd.f32 %v879_v39, %v674_v40  ;;  %v1012_v42 = vpop.f32.mrb[3].mxu0 }
 0x45a   : > { %v679_v43 = vmax.f32 %v678_v41, 0.0 }
 0x45c   : > { %1013 = vmatprep.subr.mxu1 %v679_v43 }
 0x45d   : > { %1014 = vmatpush3.msra.mxu1 %v679_v43 }
 0x45e   : > { %1016 = vmatmul.mubr.msk.f32.vlgmr.msra.gmra.mrb[2].mxu1 %vm682_vm7, %v681_v44 }
 0x531   : > { %v1017_v45 = vpop.f32.mrb[2].mxu1 }
 0x532   : > { %765 = vst.msk [vmem:[%s328_s14 + $0x8] sm:$0xff] %vm334_vm0, %v1017_v45  ;;  %v755_v46 = vpop.f32.mrb[3].mxu1 }
 0x533   : > { %764 = vst.msk [vmem:[%s328_s14] sm:$0xff] %vm334_vm0, %v755_v46 }
 0x534   : > { %1210 = shalt.err (!%p1207_p11)
}
 0x535   : > { %s1211_s21 = scalar_lea.hbm %s1554_s24, 256  ;;  %s1215_s18 = scalar_lea.hbm %s1607_s8, 512 }
 0x536   : > { %p1212_p13 = scmp.ne.s32.totalorder %s1554_s24, %s1211_s21  ;;  %p1216_p6 = scmp.lt.u32.totalorder %s1554_s24, %s1607_s8 }
 0x537   : > { %p1217_p9 = scmp.lt.u32.totalorder %s1215_s18, %s1211_s21  ;;  %p1219_p12 = scmp.lt.u32.totalorder %s1211_s21, %s1554_s24 }
 0x538   : > { %p1213_p5 = pnand %p1212_p13, %p1623_p1 }
 0x539   : > { %p1218_p10 = por %p1217_p9, %p1216_p6 }
 0x53a   : > { %p1214_p0 = pneg %p1213_p5 }
 0x53b   : > { %p1220_p2 = por %p1219_p12, %p1218_p10 }
 0x53d   : > { %p1221_p3 = pnand %p1220_p2, %p1214_p0 }
 0x53f   : > { %1224 = shalt.err (!%p1221_p3)
}
 0x540   : > { %s1279_s17 = smov 128   ;;  %s1280_s22 = smov 8  }
 0x541   : > { %1080 = dma.vmem_to_hbm [thread:$0]  (%p1623_p1), %s1549_s20, 256, %s1554_s24, %s1558_s25, %s1279_s17, %s1279_s17, %s1280_s22  }
 0x542 PF: > { %p1097_p4 = scmp.ge.s32.totalorder %s1267_s30, 2  ;;  %s795_s23 = sand.u32 1, %s1255_s27  }
 0x543   : > { %p1624_p7 = scmp.ne.s32.totalorder %s1615_s16, 0  ;;  %s796_s26 = scalar_lea.sflag [#allocation5], %s795_s23 }
 0x545   : > { %p1090_p8 = pnand %p1097_p4, %p1624_p7 }
 0x547   : > { %1250 = dma.done.wait (!%p1090_p8), %s796_s26, 256  }
 0x548   : > { %1252 = vsyncadd (!%p1090_p8), %s796_s26, 4294967040  ;;  %s1625_s9 = sld [smem:[#allocation12_spill]]  ;;  %s1626_s29 = sld [smem:[#allocation13_spill]] }
 0x549   : > { %p20_p11 = scmp.ge.s32.totalorder %s1351_s11, 4   ;;  %s1627_s27 = smov %s1259_s28 }
 0x54a   : > { %s1629_s30 = smov %s1351_s11 }
 0x54b   :  { %22 = sbr.rel (!%p20_p11) target bundleno = 5 (0x5), region = 96 }
 0x54e   : > { %s1628_s28 = smov %s1625_s9 }
 0x552   :  { %801 = vsyncpa [#allocation4], 1 }
 0x553   :  { %803 = vsyncpa [#allocation4 + $0x1], 1 }
 0x554   :  { %804 = vsyncpa [#allocation7], 1 }
 0x555   :  { %805 = vsyncpa [#allocation5], 1 }
 0x556   :  { %807 = vsyncpa [#allocation5 + $0x1], 1 }

</bundles_post_ra>
